<compile_context>
chip_gen: v7x
topology: tpu7x:2x2x1
jax: 0.10.0
libtpu: 0.0.40
codegen_flags: <defaults>
</compile_context>

<pallas_src>
import functools

import jax
import jax.numpy as jnp
from jax import lax
from jax.experimental import pallas as pl
from jax.experimental.pallas import tpu as pltpu


def _round_up(x, m):
    return ((x + m - 1) // m) * m


def _smem_column(ref, base, n):
    """Build an (n, 1) int32 column vector from n SMEM scalars.

    Uses scalar-broadcast selects only (most conservative Mosaic lowering).
    `n` is small (<= the BT tile), so the unrolled loop is cheap.
    """
    row = lax.broadcasted_iota(jnp.int32, (n, 1), 0)
    col = jnp.zeros((n, 1), jnp.int32)
    for r in range(n):
        col = jnp.where(row == r, ref[base + r], col)
    return col


def _bigram_kernel(idx_ref, tgt_ref, table_ref, logits_ref, loss_ref, acc_ref,
                   *, v, vp, bt_valid, tile_bt):
    # idx_ref / tgt_ref : SMEM (BTP,) int32   (scalar prefetch)
    # table_ref         : VMEM (VP, VP) f32   (resident across the grid)
    # logits_ref        : VMEM (TILE_BT, VP) f32  output block (lane-dense)
    # loss_ref          : SMEM (1, 1) f32     output
    # acc_ref           : SMEM (1,)  f32      loss accumulator scratch
    i = pl.program_id(0)
    base = i * tile_bt

    table = table_ref[...]                                        # (VP, VP)

    # Token / target indices for this tile, read from SMEM.
    idx_col = _smem_column(idx_ref, base, tile_bt)                # (tile, 1)
    tgt_col = _smem_column(tgt_ref, base, tile_bt)                # (tile, 1)

    # One-hot gather of embedding rows via MXU matmul (fine for toy V).
    col = lax.broadcasted_iota(jnp.int32, (tile_bt, vp), 1)       # (tile, VP)
    onehot_idx = (col == idx_col).astype(jnp.float32)             # (tile, VP)
    logits = jnp.dot(onehot_idx, table,
                     preferred_element_type=jnp.float32)          # (tile, VP)
    logits_ref[...] = logits                                      # lane-dense store

    # Cross entropy over the valid vocab columns only (padded cols masked out).
    valid_col = col < v
    masked = jnp.where(valid_col, logits, jnp.float32(-1e30))
    m = jnp.max(masked, axis=-1, keepdims=True)                   # (tile, 1)
    lse = jnp.log(jnp.sum(jnp.exp(masked - m), axis=-1, keepdims=True)) + m
    onehot_tgt = (col == tgt_col).astype(jnp.float32)
    tgt_logit = jnp.sum(onehot_tgt * logits, axis=-1, keepdims=True)

    # Mask padded rows (BT padded up to a multiple of the tile).
    row_ids = base + lax.broadcasted_iota(jnp.int32, (tile_bt, 1), 0)
    row_w = (row_ids < bt_valid).astype(jnp.float32)
    tile_loss_sum = jnp.sum((lse - tgt_logit) * row_w)

    # Init / accumulate / finalize the loss across the BT grid axis.
    @pl.when(i == 0)
    def _():
        acc_ref[0] = jnp.float32(0.0)

    acc_ref[0] = acc_ref[0] + tile_loss_sum

    @pl.when(i == pl.num_programs(0) - 1)
    def _():
        loss_ref[0, 0] = acc_ref[0] / jnp.float32(bt_valid)


@jax.jit
def bigram_forward(idx, targets, table):
    """Returns (logits[B, T, V], loss scalar) — BigramLanguageModel forward."""
    B, T = idx.shape
    V = table.shape[0]
    BT = B * T

    VP = _round_up(V, 128)                    # lane-dense vocab dimension
    TILE_BT = min(_round_up(BT, 8), 256)      # sublane-aligned row tile
    BTP = _round_up(BT, TILE_BT)
    grid = (BTP // TILE_BT,)

    # Zero-pad table to (VP, VP); padded cols are masked in-kernel for the CE.
    table_p = jnp.zeros((VP, VP), jnp.float32).at[:V, :V].set(
        table.astype(jnp.float32))
    idx_p = jnp.zeros((BTP,), jnp.int32).at[:BT].set(
        idx.reshape(BT).astype(jnp.int32))
    tgt_p = jnp.zeros((BTP,), jnp.int32).at[:BT].set(
        targets.reshape(BT).astype(jnp.int32))

    kernel = functools.partial(_bigram_kernel, v=V, vp=VP,
                               bt_valid=BT, tile_bt=TILE_BT)

    logits_p, loss = pl.pallas_call(
        kernel,
        out_shape=(
            jax.ShapeDtypeStruct((BTP, VP), jnp.float32),
            jax.ShapeDtypeStruct((1, 1), jnp.float32),
        ),
        grid_spec=pltpu.PrefetchScalarGridSpec(
            num_scalar_prefetch=2,
            grid=grid,
            in_specs=[
                # Table stays VMEM-resident across all BT tiles.
                pl.BlockSpec((VP, VP), lambda i, idx_s, tgt_s: (0, 0)),
            ],
            out_specs=(
                pl.BlockSpec((TILE_BT, VP), lambda i, idx_s, tgt_s: (i, 0)),
                pl.BlockSpec(memory_space=pltpu.SMEM),
            ),
            scratch_shapes=[pltpu.SMEM((1,), jnp.float32)],
        ),
        compiler_params=pltpu.CompilerParams(
            dimension_semantics=("arbitrary",),   # loss reduces over this axis
            vmem_limit_bytes=32 * 1024 * 1024,
        ),
    )(idx_p, tgt_p, table_p)

    logits = logits_p[:BT, :V].reshape(B, T, V)
    return logits, loss[0, 0]


if __name__ == "__main__":
    # Small, deterministic setup consistent with the module:
    # vocab_size V, batch B, sequence length T.
    V = 65
    B = 2
    T = 8

    key = jax.random.PRNGKey(0)
    k_table, k_idx, k_tgt = jax.random.split(key, 3)

    # nn.Embedding default init: N(0, 1).
    table = jax.random.normal(k_table, (V, V), dtype=jnp.float32)
    idx = jax.random.randint(k_idx, (B, T), 0, V, dtype=jnp.int32)
    targets = jax.random.randint(k_tgt, (B, T), 0, V, dtype=jnp.int32)

    logits, loss = bigram_forward(idx, targets, table)
    jax.block_until_ready((logits, loss))

    # Pure-JAX reference check.
    ref_logits = table[idx]                                        # (B, T, V)
    lf = ref_logits.reshape(B * T, V)
    tf = targets.reshape(B * T)
    ref_loss = jnp.mean(
        jax.nn.logsumexp(lf, axis=-1) - lf[jnp.arange(B * T), tf])

    assert logits.shape == (B, T, V)
    assert jnp.allclose(logits, ref_logits, atol=1e-5), "logits mismatch"
    assert jnp.allclose(loss, ref_loss, atol=1e-5), "loss mismatch"

    print("KERNEL_OK")
</pallas_src>

<mosaic_0001>
module attributes {stable_mosaic.version = 11 : i64} {
  func.func @_bigram_kernel(%arg0: i32, %arg1: memref<16xi32, #tpu.memory_space<smem>>, %arg2: memref<16xi32, #tpu.memory_space<smem>>, %arg3: memref<128x128xf32, #tpu.memory_space<vmem>>, %arg4: memref<16x128xf32, #tpu.memory_space<vmem>>, %arg5: memref<1x1xf32, #tpu.memory_space<smem>>, %arg6: memref<1xf32, #tpu.memory_space<smem>>) attributes {dimension_semantics = [#tpu.dimension_semantics<arbitrary>], iteration_bounds = array<i64: 1>, scalar_prefetch = 2 : i64, scratch_operands = 1 : i64, tpu.core_type = #tpu.core_type<tc>, window_params = [{pipeline_mode = #tpu.pipeline_mode<synchronous>, transform_indices = @transform_0, window_bounds = array<i64: 128, 128>}, {transform_indices = @transform_1, window_bounds = array<i64: 16, 128>}, {transform_indices = @transform_2, window_bounds = array<i64: 1, 1>}]} {
    %c16_i32 = arith.constant 16 : i32
    %0 = arith.muli %arg0, %c16_i32 : i32
    %c0 = arith.constant 0 : index
    %c0_0 = arith.constant 0 : index
    %1 = vector.load %arg3[%c0, %c0_0] : memref<128x128xf32, #tpu.memory_space<vmem>>, vector<128x128xf32>
    %2 = tpu.iota {dimensions = array<i32: 0>} : vector<16x1xi32>
    %c0_i32 = arith.constant 0 : i32
    %3 = vector.broadcast %c0_i32 : i32 to vector<16x1xi32>
    %c0_i32_1 = arith.constant 0 : i32
    %4 = vector.broadcast %c0_i32_1 : i32 to vector<16x1xi32>
    %5 = arith.cmpi eq, %2, %4 : vector<16x1xi32>
    %c0_i32_2 = arith.constant 0 : i32
    %6 = arith.addi %0, %c0_i32_2 : i32
    %7 = arith.index_cast %6 : i32 to index
    %8 = memref.load %arg1[%7] : memref<16xi32, #tpu.memory_space<smem>>
    %9 = vector.broadcast %8 : i32 to vector<16x1xi32>
    %10 = arith.select %5, %9, %3 : vector<16x1xi1>, vector<16x1xi32>
    %c1_i32 = arith.constant 1 : i32
    %11 = vector.broadcast %c1_i32 : i32 to vector<16x1xi32>
    %12 = arith.cmpi eq, %2, %11 : vector<16x1xi32>
    %c1_i32_3 = arith.constant 1 : i32
    %13 = arith.addi %0, %c1_i32_3 : i32
    %14 = arith.index_cast %13 : i32 to index
    %15 = memref.load %arg1[%14] : memref<16xi32, #tpu.memory_space<smem>>
    %16 = vector.broadcast %15 : i32 to vector<16x1xi32>
    %17 = arith.select %12, %16, %10 : vector<16x1xi1>, vector<16x1xi32>
    %c2_i32 = arith.constant 2 : i32
    %18 = vector.broadcast %c2_i32 : i32 to vector<16x1xi32>
    %19 = arith.cmpi eq, %2, %18 : vector<16x1xi32>
    %c2_i32_4 = arith.constant 2 : i32
    %20 = arith.addi %0, %c2_i32_4 : i32
    %21 = arith.index_cast %20 : i32 to index
    %22 = memref.load %arg1[%21] : memref<16xi32, #tpu.memory_space<smem>>
    %23 = vector.broadcast %22 : i32 to vector<16x1xi32>
    %24 = arith.select %19, %23, %17 : vector<16x1xi1>, vector<16x1xi32>
    %c3_i32 = arith.constant 3 : i32
    %25 = vector.broadcast %c3_i32 : i32 to vector<16x1xi32>
    %26 = arith.cmpi eq, %2, %25 : vector<16x1xi32>
    %c3_i32_5 = arith.constant 3 : i32
    %27 = arith.addi %0, %c3_i32_5 : i32
    %28 = arith.index_cast %27 : i32 to index
    %29 = memref.load %arg1[%28] : memref<16xi32, #tpu.memory_space<smem>>
    %30 = vector.broadcast %29 : i32 to vector<16x1xi32>
    %31 = arith.select %26, %30, %24 : vector<16x1xi1>, vector<16x1xi32>
    %c4_i32 = arith.constant 4 : i32
    %32 = vector.broadcast %c4_i32 : i32 to vector<16x1xi32>
    %33 = arith.cmpi eq, %2, %32 : vector<16x1xi32>
    %c4_i32_6 = arith.constant 4 : i32
    %34 = arith.addi %0, %c4_i32_6 : i32
    %35 = arith.index_cast %34 : i32 to index
    %36 = memref.load %arg1[%35] : memref<16xi32, #tpu.memory_space<smem>>
    %37 = vector.broadcast %36 : i32 to vector<16x1xi32>
    %38 = arith.select %33, %37, %31 : vector<16x1xi1>, vector<16x1xi32>
    %c5_i32 = arith.constant 5 : i32
    %39 = vector.broadcast %c5_i32 : i32 to vector<16x1xi32>
    %40 = arith.cmpi eq, %2, %39 : vector<16x1xi32>
    %c5_i32_7 = arith.constant 5 : i32
    %41 = arith.addi %0, %c5_i32_7 : i32
    %42 = arith.index_cast %41 : i32 to index
    %43 = memref.load %arg1[%42] : memref<16xi32, #tpu.memory_space<smem>>
    %44 = vector.broadcast %43 : i32 to vector<16x1xi32>
    %45 = arith.select %40, %44, %38 : vector<16x1xi1>, vector<16x1xi32>
    %c6_i32 = arith.constant 6 : i32
    %46 = vector.broadcast %c6_i32 : i32 to vector<16x1xi32>
    %47 = arith.cmpi eq, %2, %46 : vector<16x1xi32>
    %c6_i32_8 = arith.constant 6 : i32
    %48 = arith.addi %0, %c6_i32_8 : i32
    %49 = arith.index_cast %48 : i32 to index
    %50 = memref.load %arg1[%49] : memref<16xi32, #tpu.memory_space<smem>>
    %51 = vector.broadcast %50 : i32 to vector<16x1xi32>
    %52 = arith.select %47, %51, %45 : vector<16x1xi1>, vector<16x1xi32>
    %c7_i32 = arith.constant 7 : i32
    %53 = vector.broadcast %c7_i32 : i32 to vector<16x1xi32>
    %54 = arith.cmpi eq, %2, %53 : vector<16x1xi32>
    %c7_i32_9 = arith.constant 7 : i32
    %55 = arith.addi %0, %c7_i32_9 : i32
    %56 = arith.index_cast %55 : i32 to index
    %57 = memref.load %arg1[%56] : memref<16xi32, #tpu.memory_space<smem>>
    %58 = vector.broadcast %57 : i32 to vector<16x1xi32>
    %59 = arith.select %54, %58, %52 : vector<16x1xi1>, vector<16x1xi32>
    %c8_i32 = arith.constant 8 : i32
    %60 = vector.broadcast %c8_i32 : i32 to vector<16x1xi32>
    %61 = arith.cmpi eq, %2, %60 : vector<16x1xi32>
    %c8_i32_10 = arith.constant 8 : i32
    %62 = arith.addi %0, %c8_i32_10 : i32
    %63 = arith.index_cast %62 : i32 to index
    %64 = memref.load %arg1[%63] : memref<16xi32, #tpu.memory_space<smem>>
    %65 = vector.broadcast %64 : i32 to vector<16x1xi32>
    %66 = arith.select %61, %65, %59 : vector<16x1xi1>, vector<16x1xi32>
    %c9_i32 = arith.constant 9 : i32
    %67 = vector.broadcast %c9_i32 : i32 to vector<16x1xi32>
    %68 = arith.cmpi eq, %2, %67 : vector<16x1xi32>
    %c9_i32_11 = arith.constant 9 : i32
    %69 = arith.addi %0, %c9_i32_11 : i32
    %70 = arith.index_cast %69 : i32 to index
    %71 = memref.load %arg1[%70] : memref<16xi32, #tpu.memory_space<smem>>
    %72 = vector.broadcast %71 : i32 to vector<16x1xi32>
    %73 = arith.select %68, %72, %66 : vector<16x1xi1>, vector<16x1xi32>
    %c10_i32 = arith.constant 10 : i32
    %74 = vector.broadcast %c10_i32 : i32 to vector<16x1xi32>
    %75 = arith.cmpi eq, %2, %74 : vector<16x1xi32>
    %c10_i32_12 = arith.constant 10 : i32
    %76 = arith.addi %0, %c10_i32_12 : i32
    %77 = arith.index_cast %76 : i32 to index
    %78 = memref.load %arg1[%77] : memref<16xi32, #tpu.memory_space<smem>>
    %79 = vector.broadcast %78 : i32 to vector<16x1xi32>
    %80 = arith.select %75, %79, %73 : vector<16x1xi1>, vector<16x1xi32>
    %c11_i32 = arith.constant 11 : i32
    %81 = vector.broadcast %c11_i32 : i32 to vector<16x1xi32>
    %82 = arith.cmpi eq, %2, %81 : vector<16x1xi32>
    %c11_i32_13 = arith.constant 11 : i32
    %83 = arith.addi %0, %c11_i32_13 : i32
    %84 = arith.index_cast %83 : i32 to index
    %85 = memref.load %arg1[%84] : memref<16xi32, #tpu.memory_space<smem>>
    %86 = vector.broadcast %85 : i32 to vector<16x1xi32>
    %87 = arith.select %82, %86, %80 : vector<16x1xi1>, vector<16x1xi32>
    %c12_i32 = arith.constant 12 : i32
    %88 = vector.broadcast %c12_i32 : i32 to vector<16x1xi32>
    %89 = arith.cmpi eq, %2, %88 : vector<16x1xi32>
    %c12_i32_14 = arith.constant 12 : i32
    %90 = arith.addi %0, %c12_i32_14 : i32
    %91 = arith.index_cast %90 : i32 to index
    %92 = memref.load %arg1[%91] : memref<16xi32, #tpu.memory_space<smem>>
    %93 = vector.broadcast %92 : i32 to vector<16x1xi32>
    %94 = arith.select %89, %93, %87 : vector<16x1xi1>, vector<16x1xi32>
    %c13_i32 = arith.constant 13 : i32
    %95 = vector.broadcast %c13_i32 : i32 to vector<16x1xi32>
    %96 = arith.cmpi eq, %2, %95 : vector<16x1xi32>
    %c13_i32_15 = arith.constant 13 : i32
    %97 = arith.addi %0, %c13_i32_15 : i32
    %98 = arith.index_cast %97 : i32 to index
    %99 = memref.load %arg1[%98] : memref<16xi32, #tpu.memory_space<smem>>
    %100 = vector.broadcast %99 : i32 to vector<16x1xi32>
    %101 = arith.select %96, %100, %94 : vector<16x1xi1>, vector<16x1xi32>
    %c14_i32 = arith.constant 14 : i32
    %102 = vector.broadcast %c14_i32 : i32 to vector<16x1xi32>
    %103 = arith.cmpi eq, %2, %102 : vector<16x1xi32>
    %c14_i32_16 = arith.constant 14 : i32
    %104 = arith.addi %0, %c14_i32_16 : i32
    %105 = arith.index_cast %104 : i32 to index
    %106 = memref.load %arg1[%105] : memref<16xi32, #tpu.memory_space<smem>>
    %107 = vector.broadcast %106 : i32 to vector<16x1xi32>
    %108 = arith.select %103, %107, %101 : vector<16x1xi1>, vector<16x1xi32>
    %c15_i32 = arith.constant 15 : i32
    %109 = vector.broadcast %c15_i32 : i32 to vector<16x1xi32>
    %110 = arith.cmpi eq, %2, %109 : vector<16x1xi32>
    %c15_i32_17 = arith.constant 15 : i32
    %111 = arith.addi %0, %c15_i32_17 : i32
    %112 = arith.index_cast %111 : i32 to index
    %113 = memref.load %arg1[%112] : memref<16xi32, #tpu.memory_space<smem>>
    %114 = vector.broadcast %113 : i32 to vector<16x1xi32>
    %115 = arith.select %110, %114, %108 : vector<16x1xi1>, vector<16x1xi32>
    %116 = tpu.iota {dimensions = array<i32: 0>} : vector<16x1xi32>
    %c0_i32_18 = arith.constant 0 : i32
    %117 = vector.broadcast %c0_i32_18 : i32 to vector<16x1xi32>
    %c0_i32_19 = arith.constant 0 : i32
    %118 = vector.broadcast %c0_i32_19 : i32 to vector<16x1xi32>
    %119 = arith.cmpi eq, %116, %118 : vector<16x1xi32>
    %c0_i32_20 = arith.constant 0 : i32
    %120 = arith.addi %0, %c0_i32_20 : i32
    %121 = arith.index_cast %120 : i32 to index
    %122 = memref.load %arg2[%121] : memref<16xi32, #tpu.memory_space<smem>>
    %123 = vector.broadcast %122 : i32 to vector<16x1xi32>
    %124 = arith.select %119, %123, %117 : vector<16x1xi1>, vector<16x1xi32>
    %c1_i32_21 = arith.constant 1 : i32
    %125 = vector.broadcast %c1_i32_21 : i32 to vector<16x1xi32>
    %126 = arith.cmpi eq, %116, %125 : vector<16x1xi32>
    %c1_i32_22 = arith.constant 1 : i32
    %127 = arith.addi %0, %c1_i32_22 : i32
    %128 = arith.index_cast %127 : i32 to index
    %129 = memref.load %arg2[%128] : memref<16xi32, #tpu.memory_space<smem>>
    %130 = vector.broadcast %129 : i32 to vector<16x1xi32>
    %131 = arith.select %126, %130, %124 : vector<16x1xi1>, vector<16x1xi32>
    %c2_i32_23 = arith.constant 2 : i32
    %132 = vector.broadcast %c2_i32_23 : i32 to vector<16x1xi32>
    %133 = arith.cmpi eq, %116, %132 : vector<16x1xi32>
    %c2_i32_24 = arith.constant 2 : i32
    %134 = arith.addi %0, %c2_i32_24 : i32
    %135 = arith.index_cast %134 : i32 to index
    %136 = memref.load %arg2[%135] : memref<16xi32, #tpu.memory_space<smem>>
    %137 = vector.broadcast %136 : i32 to vector<16x1xi32>
    %138 = arith.select %133, %137, %131 : vector<16x1xi1>, vector<16x1xi32>
    %c3_i32_25 = arith.constant 3 : i32
    %139 = vector.broadcast %c3_i32_25 : i32 to vector<16x1xi32>
    %140 = arith.cmpi eq, %116, %139 : vector<16x1xi32>
    %c3_i32_26 = arith.constant 3 : i32
    %141 = arith.addi %0, %c3_i32_26 : i32
    %142 = arith.index_cast %141 : i32 to index
    %143 = memref.load %arg2[%142] : memref<16xi32, #tpu.memory_space<smem>>
    %144 = vector.broadcast %143 : i32 to vector<16x1xi32>
    %145 = arith.select %140, %144, %138 : vector<16x1xi1>, vector<16x1xi32>
    %c4_i32_27 = arith.constant 4 : i32
    %146 = vector.broadcast %c4_i32_27 : i32 to vector<16x1xi32>
    %147 = arith.cmpi eq, %116, %146 : vector<16x1xi32>
    %c4_i32_28 = arith.constant 4 : i32
    %148 = arith.addi %0, %c4_i32_28 : i32
    %149 = arith.index_cast %148 : i32 to index
    %150 = memref.load %arg2[%149] : memref<16xi32, #tpu.memory_space<smem>>
    %151 = vector.broadcast %150 : i32 to vector<16x1xi32>
    %152 = arith.select %147, %151, %145 : vector<16x1xi1>, vector<16x1xi32>
    %c5_i32_29 = arith.constant 5 : i32
    %153 = vector.broadcast %c5_i32_29 : i32 to vector<16x1xi32>
    %154 = arith.cmpi eq, %116, %153 : vector<16x1xi32>
    %c5_i32_30 = arith.constant 5 : i32
    %155 = arith.addi %0, %c5_i32_30 : i32
    %156 = arith.index_cast %155 : i32 to index
    %157 = memref.load %arg2[%156] : memref<16xi32, #tpu.memory_space<smem>>
    %158 = vector.broadcast %157 : i32 to vector<16x1xi32>
    %159 = arith.select %154, %158, %152 : vector<16x1xi1>, vector<16x1xi32>
    %c6_i32_31 = arith.constant 6 : i32
    %160 = vector.broadcast %c6_i32_31 : i32 to vector<16x1xi32>
    %161 = arith.cmpi eq, %116, %160 : vector<16x1xi32>
    %c6_i32_32 = arith.constant 6 : i32
    %162 = arith.addi %0, %c6_i32_32 : i32
    %163 = arith.index_cast %162 : i32 to index
    %164 = memref.load %arg2[%163] : memref<16xi32, #tpu.memory_space<smem>>
    %165 = vector.broadcast %164 : i32 to vector<16x1xi32>
    %166 = arith.select %161, %165, %159 : vector<16x1xi1>, vector<16x1xi32>
    %c7_i32_33 = arith.constant 7 : i32
    %167 = vector.broadcast %c7_i32_33 : i32 to vector<16x1xi32>
    %168 = arith.cmpi eq, %116, %167 : vector<16x1xi32>
    %c7_i32_34 = arith.constant 7 : i32
    %169 = arith.addi %0, %c7_i32_34 : i32
    %170 = arith.index_cast %169 : i32 to index
    %171 = memref.load %arg2[%170] : memref<16xi32, #tpu.memory_space<smem>>
    %172 = vector.broadcast %171 : i32 to vector<16x1xi32>
    %173 = arith.select %168, %172, %166 : vector<16x1xi1>, vector<16x1xi32>
    %c8_i32_35 = arith.constant 8 : i32
    %174 = vector.broadcast %c8_i32_35 : i32 to vector<16x1xi32>
    %175 = arith.cmpi eq, %116, %174 : vector<16x1xi32>
    %c8_i32_36 = arith.constant 8 : i32
    %176 = arith.addi %0, %c8_i32_36 : i32
    %177 = arith.index_cast %176 : i32 to index
    %178 = memref.load %arg2[%177] : memref<16xi32, #tpu.memory_space<smem>>
    %179 = vector.broadcast %178 : i32 to vector<16x1xi32>
    %180 = arith.select %175, %179, %173 : vector<16x1xi1>, vector<16x1xi32>
    %c9_i32_37 = arith.constant 9 : i32
    %181 = vector.broadcast %c9_i32_37 : i32 to vector<16x1xi32>
    %182 = arith.cmpi eq, %116, %181 : vector<16x1xi32>
    %c9_i32_38 = arith.constant 9 : i32
    %183 = arith.addi %0, %c9_i32_38 : i32
    %184 = arith.index_cast %183 : i32 to index
    %185 = memref.load %arg2[%184] : memref<16xi32, #tpu.memory_space<smem>>
    %186 = vector.broadcast %185 : i32 to vector<16x1xi32>
    %187 = arith.select %182, %186, %180 : vector<16x1xi1>, vector<16x1xi32>
    %c10_i32_39 = arith.constant 10 : i32
    %188 = vector.broadcast %c10_i32_39 : i32 to vector<16x1xi32>
    %189 = arith.cmpi eq, %116, %188 : vector<16x1xi32>
    %c10_i32_40 = arith.constant 10 : i32
    %190 = arith.addi %0, %c10_i32_40 : i32
    %191 = arith.index_cast %190 : i32 to index
    %192 = memref.load %arg2[%191] : memref<16xi32, #tpu.memory_space<smem>>
    %193 = vector.broadcast %192 : i32 to vector<16x1xi32>
    %194 = arith.select %189, %193, %187 : vector<16x1xi1>, vector<16x1xi32>
    %c11_i32_41 = arith.constant 11 : i32
    %195 = vector.broadcast %c11_i32_41 : i32 to vector<16x1xi32>
    %196 = arith.cmpi eq, %116, %195 : vector<16x1xi32>
    %c11_i32_42 = arith.constant 11 : i32
    %197 = arith.addi %0, %c11_i32_42 : i32
    %198 = arith.index_cast %197 : i32 to index
    %199 = memref.load %arg2[%198] : memref<16xi32, #tpu.memory_space<smem>>
    %200 = vector.broadcast %199 : i32 to vector<16x1xi32>
    %201 = arith.select %196, %200, %194 : vector<16x1xi1>, vector<16x1xi32>
    %c12_i32_43 = arith.constant 12 : i32
    %202 = vector.broadcast %c12_i32_43 : i32 to vector<16x1xi32>
    %203 = arith.cmpi eq, %116, %202 : vector<16x1xi32>
    %c12_i32_44 = arith.constant 12 : i32
    %204 = arith.addi %0, %c12_i32_44 : i32
    %205 = arith.index_cast %204 : i32 to index
    %206 = memref.load %arg2[%205] : memref<16xi32, #tpu.memory_space<smem>>
    %207 = vector.broadcast %206 : i32 to vector<16x1xi32>
    %208 = arith.select %203, %207, %201 : vector<16x1xi1>, vector<16x1xi32>
    %c13_i32_45 = arith.constant 13 : i32
    %209 = vector.broadcast %c13_i32_45 : i32 to vector<16x1xi32>
    %210 = arith.cmpi eq, %116, %209 : vector<16x1xi32>
    %c13_i32_46 = arith.constant 13 : i32
    %211 = arith.addi %0, %c13_i32_46 : i32
    %212 = arith.index_cast %211 : i32 to index
    %213 = memref.load %arg2[%212] : memref<16xi32, #tpu.memory_space<smem>>
    %214 = vector.broadcast %213 : i32 to vector<16x1xi32>
    %215 = arith.select %210, %214, %208 : vector<16x1xi1>, vector<16x1xi32>
    %c14_i32_47 = arith.constant 14 : i32
    %216 = vector.broadcast %c14_i32_47 : i32 to vector<16x1xi32>
    %217 = arith.cmpi eq, %116, %216 : vector<16x1xi32>
    %c14_i32_48 = arith.constant 14 : i32
    %218 = arith.addi %0, %c14_i32_48 : i32
    %219 = arith.index_cast %218 : i32 to index
    %220 = memref.load %arg2[%219] : memref<16xi32, #tpu.memory_space<smem>>
    %221 = vector.broadcast %220 : i32 to vector<16x1xi32>
    %222 = arith.select %217, %221, %215 : vector<16x1xi1>, vector<16x1xi32>
    %c15_i32_49 = arith.constant 15 : i32
    %223 = vector.broadcast %c15_i32_49 : i32 to vector<16x1xi32>
    %224 = arith.cmpi eq, %116, %223 : vector<16x1xi32>
    %c15_i32_50 = arith.constant 15 : i32
    %225 = arith.addi %0, %c15_i32_50 : i32
    %226 = arith.index_cast %225 : i32 to index
    %227 = memref.load %arg2[%226] : memref<16xi32, #tpu.memory_space<smem>>
    %228 = vector.broadcast %227 : i32 to vector<16x1xi32>
    %229 = arith.select %224, %228, %222 : vector<16x1xi1>, vector<16x1xi32>
    %230 = tpu.iota {dimensions = array<i32: 1>} : vector<16x128xi32>
    %231 = vector.broadcast %115 : vector<16x1xi32> to vector<16x128xi32>
    %232 = arith.cmpi eq, %230, %231 : vector<16x128xi32>
    %233 = arith.extui %232 : vector<16x128xi1> to vector<16x128xi32>
    %234 = arith.sitofp %233 : vector<16x128xi32> to vector<16x128xf32>
    %cst = arith.constant dense<0.000000e+00> : vector<16x128xf32>
    %235 = tpu.matmul %234, %1, %cst {dimension_numbers = #tpu.dot_dimension_numbers<[1], [0], [0], [1], [0, 0, 1, 1], [], []>} : vector<16x128xf32>, vector<128x128xf32>, vector<16x128xf32> -> vector<16x128xf32>
    %c0_51 = arith.constant 0 : index
    %c0_52 = arith.constant 0 : index
    %236 = vector.load %arg4[%c0_51, %c0_52] : memref<16x128xf32, #tpu.memory_space<vmem>>, vector<16x128xf32>
    tpu.vector_store %arg4[%c0_51, %c0_52], %235 {strides = array<i32>} : memref<16x128xf32, #tpu.memory_space<vmem>>, vector<16x128xf32>,
    %c65_i32 = arith.constant 65 : i32
    %237 = vector.broadcast %c65_i32 : i32 to vector<16x128xi32>
    %238 = arith.cmpi slt, %230, %237 : vector<16x128xi32>
    %cst_53 = arith.constant -1.000000e+30 : f32
    %239 = vector.broadcast %cst_53 : f32 to vector<16x128xf32>
    %240 = arith.select %238, %235, %239 : vector<16x128xi1>, vector<16x128xf32>
    %cst_54 = arith.constant dense<0xFF800000> : vector<16xf32>
    %241 = vector.multi_reduction <maximumf>, %240, %cst_54 [1] : vector<16x128xf32> to vector<16xf32>
    %242 = vector.shape_cast %241 : vector<16xf32> to vector<16x1xf32>
    %243 = vector.broadcast %242 : vector<16x1xf32> to vector<16x128xf32>
    %244 = arith.subf %240, %243 : vector<16x128xf32>
    %245 = math.exp %244 : vector<16x128xf32>
    %cst_55 = arith.constant dense<0.000000e+00> : vector<16xf32>
    %246 = vector.multi_reduction <add>, %245, %cst_55 [1] : vector<16x128xf32> to vector<16xf32>
    %247 = vector.shape_cast %246 : vector<16xf32> to vector<16x1xf32>
    %248 = math.log %247 : vector<16x1xf32>
    %249 = arith.addf %248, %242 : vector<16x1xf32>
    %250 = vector.broadcast %229 : vector<16x1xi32> to vector<16x128xi32>
    %251 = arith.cmpi eq, %230, %250 : vector<16x128xi32>
    %252 = arith.extui %251 : vector<16x128xi1> to vector<16x128xi32>
    %253 = arith.sitofp %252 : vector<16x128xi32> to vector<16x128xf32>
    %254 = arith.mulf %253, %235 : vector<16x128xf32>
    %cst_56 = arith.constant dense<0.000000e+00> : vector<16xf32>
    %255 = vector.multi_reduction <add>, %254, %cst_56 [1] : vector<16x128xf32> to vector<16xf32>
    %256 = vector.shape_cast %255 : vector<16xf32> to vector<16x1xf32>
    %257 = tpu.iota {dimensions = array<i32: 0>} : vector<16x1xi32>
    %258 = vector.broadcast %0 : i32 to vector<16x1xi32>
    %259 = arith.addi %258, %257 : vector<16x1xi32>
    %c16_i32_57 = arith.constant 16 : i32
    %260 = vector.broadcast %c16_i32_57 : i32 to vector<16x1xi32>
    %261 = arith.cmpi slt, %259, %260 : vector<16x1xi32>
    %262 = arith.extui %261 : vector<16x1xi1> to vector<16x1xi32>
    %263 = arith.sitofp %262 : vector<16x1xi32> to vector<16x1xf32>
    %264 = arith.subf %249, %256 : vector<16x1xf32>
    %265 = arith.mulf %264, %263 : vector<16x1xf32>
    %266 = vector.shape_cast %265 : vector<16x1xf32> to vector<1x16x1xf32>
    %cst_58 = arith.constant dense<0.000000e+00> : vector<1xf32>
    %267 = vector.multi_reduction <add>, %266, %cst_58 [1, 2] : vector<1x16x1xf32> to vector<1xf32>
    %268 = vector.shape_cast %267 : vector<1xf32> to vector<1x1x1xf32>
    %269 = vector.extract %268[0, 0, 0] : f32 from vector<1x1x1xf32>
    %c0_i32_59 = arith.constant 0 : i32
    %270 = arith.cmpi eq, %arg0, %c0_i32_59 : i32
    %271 = arith.extui %270 : i1 to i32
    %c0_i32_60 = arith.constant 0 : i32
    %272 = arith.cmpi ne, %271, %c0_i32_60 : i32
    scf.if %272 {
      %cst_65 = arith.constant 0.000000e+00 : f32
      %c0_66 = arith.constant 0 : index
      %279 = memref.load %arg6[%c0_66] : memref<1xf32, #tpu.memory_space<smem>>
      memref.store %cst_65, %arg6[%c0_66] : memref<1xf32, #tpu.memory_space<smem>>
    } else {
    }
    %c0_61 = arith.constant 0 : index
    %273 = memref.load %arg6[%c0_61] : memref<1xf32, #tpu.memory_space<smem>>
    %274 = arith.addf %273, %269 : f32
    %c0_62 = arith.constant 0 : index
    %275 = memref.load %arg6[%c0_62] : memref<1xf32, #tpu.memory_space<smem>>
    memref.store %274, %arg6[%c0_62] : memref<1xf32, #tpu.memory_space<smem>>
    %c0_i32_63 = arith.constant 0 : i32
    %276 = arith.cmpi eq, %arg0, %c0_i32_63 : i32
    %277 = arith.extui %276 : i1 to i32
    %c0_i32_64 = arith.constant 0 : i32
    %278 = arith.cmpi ne, %277, %c0_i32_64 : i32
    scf.if %278 {
      %c0_65 = arith.constant 0 : index
      %279 = memref.load %arg6[%c0_65] : memref<1xf32, #tpu.memory_space<smem>>
      %cst_66 = arith.constant 1.600000e+01 : f32
      %280 = arith.divf %279, %cst_66 : f32
      %c0_67 = arith.constant 0 : index
      %c0_68 = arith.constant 0 : index
      %281 = memref.load %arg5[%c0_67, %c0_68] : memref<1x1xf32, #tpu.memory_space<smem>>
      memref.store %280, %arg5[%c0_67, %c0_68] : memref<1x1xf32, #tpu.memory_space<smem>>
    } else {
    }
    return
  }
  func.func @transform_0(%arg0: i32, %arg1: memref<16xi32, #tpu.memory_space<smem>>, %arg2: memref<16xi32, #tpu.memory_space<smem>>) -> (i32, i32) {
    %c0_i32 = arith.constant 0 : i32
    %c0_i32_0 = arith.constant 0 : i32
    %c0_i32_1 = arith.constant 0 : i32
    return %c0_i32, %c0_i32_0 : i32, i32
  }
  func.func @transform_1(%arg0: i32, %arg1: memref<16xi32, #tpu.memory_space<smem>>, %arg2: memref<16xi32, #tpu.memory_space<smem>>) -> (i32, i32) {
    %c0_i32 = arith.constant 0 : i32
    %c0_i32_0 = arith.constant 0 : i32
    return %arg0, %c0_i32 : i32, i32
  }
  func.func @transform_2(%arg0: i32, %arg1: memref<16xi32, #tpu.memory_space<smem>>, %arg2: memref<16xi32, #tpu.memory_space<smem>>) -> (i32, i32) {
    %c0_i32 = arith.constant 0 : i32
    %c0_i32_0 = arith.constant 0 : i32
    %c0_i32_1 = arith.constant 0 : i32
    return %c0_i32, %c0_i32_0 : i32, i32
  }
}

</mosaic_0001>

<bundles_post_ra>
// kernel: bigram_forward.1
= control target key start
LH: loop header
LB: loop body
LE: loop exit
PB: predicated region body
PF: predicated region fallthrough
CT: control target
= control target key end

     0   :  { %s801_s0 = inlined_call_operand.vmem [shape: s32[16], index: 0, kind: input, shape index: {}]   ;;  %s802_s2 = inlined_call_operand.vmem [shape: f32[128,128], index: 2, kind: input, shape index: {}]   ;;  %s803_s3 = inlined_call_operand.vmem [shape: f32[16,128], index: 3, kind: output, shape index: {0}]   ;;  %s804_s4 = inlined_call_operand.hbm [shape: f32[1,1], index: 4, kind: output, shape index: {1}]   ;;  %s805_s1 = inlined_call_operand.vmem [shape: s32[16], index: 1, kind: input, shape index: {}]  }
   0x1   :  { %s10_s17 = sshll.u32 %s801_s0, 4  ;;  %s14_s20 = sshll.u32 %s805_s1, 4  ;;  %s11_s17 = int_to_ptr.vmem [resolvable:$true] %s10_s17  ;;  %s15_s20 = int_to_ptr.vmem [resolvable:$true] %s14_s20 }
   0x2   :  { %s536_s21 = scalar_lea.vmem %s11_s17, 16  ;;  %p541_p1 = scmp.lt.s32.totalorder %s11_s17, %s11_s17 }
   0x3   :  { %p537_p0 = scmp.ne.s32.totalorder %s11_s17, %s536_s21  ;;  %p542_p2 = scmp.lt.s32.totalorder %s536_s21, %s536_s21 }
   0x5   :  { %p543_p3 = por %p542_p2, %p541_p1 }
   0x7   :  { %p544_p4 = pnand %p543_p3, %p537_p0 }
   0x9   :  { %547 = shalt.err (!%p544_p4)  }
   0xa   :  { %s574_s22 = smov [#allocation4]   ;;  %s548_s23 = scalar_lea.vmem %s15_s20, 16 }
   0xb   :  { %13 = dma.vmem_to_smem %s11_s17, 16, %s574_s22, [#allocation3] }
   0xc   :  { %p549_p5 = scmp.ne.s32.totalorder %s15_s20, %s548_s23  ;;  %p553_p6 = scmp.lt.s32.totalorder %s15_s20, %s15_s20 }
   0xd   :  { %p554_p7 = scmp.lt.s32.totalorder %s548_s23, %s548_s23 }
   0xf   :  { %p555_p8 = por %p554_p7, %p553_p6 }
  0x11   :  { %p556_p9 = pnand %p555_p8, %p549_p5 }
  0x13   :  { %559 = shalt.err (!%p556_p9)  }
  0x14   :  { %s575_s0 = smov [#allocation5]  }
  0x15   :  { %17 = dma.vmem_to_smem %s15_s20, 16, %s575_s0, [#allocation3] }
  0x16   :  { %570 = dma.done.wait [#allocation3], 32 }
  0x17   :  { %571 = vsyncadd [#allocation3], 4294967264 }
  0x18   :  { %19 = sfence }
  0x19   :  { %v24_v0 = vld [vmem:[%s802_s2] sm:$0xff]  ;;  %v25_v1 = vld [vmem:[%s802_s2 + $0x8] sm:$0xff]  ;;  %v26_v2 = vld [vmem:[%s802_s2 + $0x10] sm:$0xff]  ;;  %v40_v3 = vlaneseq  ;;  %s45_s29 = sld [smem:[#allocation4]]  ;;  %s400_s6 = sld [smem:[#allocation4 + $0x1]] }
  0x1a   :  { %v489_v4 = vpack.c.bf16 %v25_v1, %v24_v0  ;;  %v27_v5 = vld [vmem:[%s802_s2 + $0x18] sm:$0xff]  ;;  %v28_v7 = vld [vmem:[%s802_s2 + $0x20] sm:$0xff]  ;;  %v29_v8 = vld [vmem:[%s802_s2 + $0x28] sm:$0xff]  ;;  %s401_s11 = sld [smem:[#allocation4 + $0x2]]  ;;  %s630_s12 = sld [smem:[#allocation4 + $0x3]] }
  0x1b   :  { %v493_v6 = vpack.c.bf16 %v27_v5, %v26_v2  ;;  %v628_v9 = vshrl.u32 %v40_v3, 7  ;;  %v497_v10 = vpack.c.bf16 %v29_v8, %v28_v7  ;;  %v30_v11 = vld [vmem:[%s802_s2 + $0x30] sm:$0xff]  ;;  %s637_s15 = sld [smem:[#allocation4 + $0x4]]  ;;  %v31_v12 = vld [vmem:[%s802_s2 + $0x38] sm:$0xff]  ;;  %s643_s18 = sld [smem:[#allocation4 + $0x5]]  ;;  %v32_v14 = vld [vmem:[%s802_s2 + $0x40] sm:$0xff] }
  0x1c   :  { %490 = vmatprep.subr.bf16.mxu0 %v489_v4  ;;  %s645_s19 = sld [smem:[#allocation4 + $0x6]]  ;;  %v33_v15 = vld [vmem:[%s802_s2 + $0x48] sm:$0xff]  ;;  %s656_s0 = sld [smem:[#allocation4 + $0x7]]  ;;  %v501_v21 = vpack.c.bf16 %v31_v12, %v30_v11 }
  0x1d   :  { %492 = vmatpush3.bf16.msra.mxu0 %v489_v4  ;;  %vm43_vm0 = vcmp.eq.s32.totalorder %v628_v9, 0  ;;  %vm49_vm1 = vcmp.eq.s32.totalorder %v628_v9, 1  ;;  %vm56_vm2 = vcmp.eq.s32.totalorder %v628_v9, 2  ;;  %vm63_vm3 = vcmp.eq.s32.totalorder %v628_v9, 3  ;;  %s664_s1 = sld [smem:[#allocation4 + $0x8]]  ;;  %s666_s24 = sld [smem:[#allocation4 + $0x9]] }
  0x1e   :  { %494 = vmatprep.subr.bf16.mxu0 %v493_v6  ;;  %vm70_vm4 = vcmp.eq.s32.totalorder %v628_v9, 4  ;;  %v662_v20 = vadd.s32 8, %v628_v9  ;;  %s671_s25 = sld [smem:[#allocation4 + $0xa]]  ;;  %s673_s26 = sld [smem:[#allocation4 + $0xb]] }
  0x1f   :  { %v46_v13 = vstv %s45_s29  ;;  %v53_v17 = vstv %s400_s6 }
  0x20   :  { %v47_v16 = vsel %vm43_vm0, %v46_v13, 0  ;;  %v60_v19 = vstv %s401_s11  ;;  %v67_v23 = vstv %s630_s12 }
  0x21   :  { %496 = vmatpush3.bf16.msra.mxu0 %v493_v6  ;;  %v54_v18 = vsel %vm49_vm1, %v53_v17, %v47_v16 }
  0x22   :  { %498 = vmatprep.subr.bf16.mxu0 %v497_v10  ;;  %v61_v22 = vsel %vm56_vm2, %v60_v19, %v54_v18 }
  0x23   :  { %20 = vsyncpa [#allocation7], 0  ;;  %v68_v24 = vsel %vm63_vm3, %v67_v23, %v61_v22  ;;  %vm77_vm5 = vcmp.eq.s32.totalorder %v628_v9, 5  ;;  %v678_v25 = vand.u32 127, %v40_v3  ;;  %s680_s27 = sld [smem:[#allocation4 + $0xc]]  ;;  %v505_v26 = vpack.c.bf16 %v33_v15, %v32_v14  ;;  %s690_s28 = sld [smem:[#allocation4 + $0xd]] }
  0x24   :  { %v74_v27 = vstv %s637_s15  ;;  %vm84_vm6 = vcmp.eq.s32.totalorder %v628_v9, 6  ;;  %vm806_vm7 = vcmp.eq.s32.totalorder %v628_v9, 7  ;;  %v81_v29 = vstv %s643_s18  ;;  %v34_v33 = vld [vmem:[%s802_s2 + $0x50] sm:$0xff]  ;;  %v35_v34 = vld [vmem:[%s802_s2 + $0x58] sm:$0xff]  ;;  %s413_s7 = sld [smem:[#allocation4 + $0xe]]  ;;  %s414_s12 = sld [smem:[#allocation4 + $0xf]] }
  0x25   :  { %500 = vmatpush3.bf16.msra.mxu0 %v497_v10  ;;  %v75_v28 = vsel %vm70_vm4, %v74_v27, %v68_v24  ;;  %v88_v30 = vstv %s645_s19  ;;  %vm99_vm8 = vcmp.eq.s32.totalorder %v662_v20, 8  ;;  %v95_v32 = vstv %s656_s0  ;;  %v36_v47 = vld [vmem:[%s802_s2 + $0x60] sm:$0xff]  ;;  %v37_v48 = vld [vmem:[%s802_s2 + $0x68] sm:$0xff]  ;;  %s154_s17 = sld [smem:[#allocation5]]  ;;  %s423_s18 = sld [smem:[#allocation5 + $0x9]] }
  0x26   :  { %502 = vmatprep.subr.bf16.mxu0 %v501_v21  ;;  %v82_v31 = vsel %vm77_vm5, %v81_v29, %v75_v28  ;;  %vm106_vm9 = vcmp.eq.s32.totalorder %v662_v20, 9  ;;  %vm113_vm10 = vcmp.eq.s32.totalorder %v662_v20, 10  ;;  %v102_v36 = vstv %s664_s1  ;;  %v38_v53 = vld [vmem:[%s802_s2 + $0x70] sm:$0xff]  ;;  %v39_v54 = vld [vmem:[%s802_s2 + $0x78] sm:$0xff]  ;;  %s422_s2 = sld [smem:[#allocation5 + $0x8]]  ;;  %s415_s19 = sld [smem:[#allocation5 + $0x1]] }
  0x27   :  { %v89_v35 = vsel %vm84_vm6, %v88_v30, %v82_v31  ;;  %v109_v37 = vstv %s666_s24  ;;  %vm120_vm11 = vcmp.eq.s32.totalorder %v662_v20, 11  ;;  %v104_v39 = vsel %vm99_vm8, %v102_v36, 0  ;;  %s424_s20 = sld [smem:[#allocation5 + $0xa]]  ;;  %s425_s22 = sld [smem:[#allocation5 + $0xb]] }
  0x28   :  { %v96_v38 = vsel %vm806_vm7, %v95_v32, %v89_v35  ;;  %v116_v40 = vstv %s671_s25  ;;  %v123_v41 = vstv %s673_s26  ;;  %v111_v42 = vsel %vm106_vm9, %v109_v37, %v104_v39  ;;  %s416_s21 = sld [smem:[#allocation5 + $0x2]]  ;;  %s417_s23 = sld [smem:[#allocation5 + $0x3]] }
  0x29   :  { %504 = vmatpush3.bf16.msra.mxu0 %v501_v21  ;;  %vm220_vm12 = vcmp.eq.s32.totalorder %v678_v25, %v96_v38  ;;  %v509_v43 = vpack.c.bf16 %v35_v34, %v34_v33  ;;  %v576_v44 = vmov 1.0   ;;  %v118_v45 = vsel %vm113_vm10, %v116_v40, %v111_v42  ;;  %s426_s0 = sld [smem:[#allocation5 + $0xc]]  ;;  %s427_s24 = sld [smem:[#allocation5 + $0xd]] }
  0x2a   :  { %506 = vmatprep.subr.bf16.mxu0 %v505_v26  ;;  %486 = vmatprep.mubr.msk.f32.mxu0 %vm220_vm12, %v576_v44  ;;  %vm127_vm13 = vcmp.eq.s32.totalorder %v662_v20, 12  ;;  %v130_v46 = vstv %s680_s27  ;;  %v125_v49 = vsel %vm120_vm11, %v123_v41, %v118_v45  ;;  %vm134_vm14 = vcmp.eq.s32.totalorder %v662_v20, 13  ;;  %s418_s1 = sld [smem:[#allocation5 + $0x4]]  ;;  %s419_s25 = sld [smem:[#allocation5 + $0x5]] }
  0x2b   :  { %v132_v50 = vsel %vm127_vm13, %v130_v46, %v125_v49  ;;  %v137_v51 = vstv %s690_s28  ;;  %v513_v52 = vpack.c.bf16 %v37_v48, %v36_v47  ;;  %vm141_vm15 = vcmp.eq.s32.totalorder %v662_v20, 14  ;;  %s428_s26 = sld [smem:[#allocation5 + $0xe]]  ;;  %s429_s28 = sld [smem:[#allocation5 + $0xf]] }
  0x2c   :  { %v139_v55 = vsel %vm134_vm14, %v137_v51, %v132_v50  ;;  %v144_v56 = vstv %s413_s7  ;;  %v517_v57 = vpack.c.bf16 %v39_v54, %v38_v53  ;;  %vm148_vm12 = vcmp.eq.s32.totalorder %v662_v20, 15  ;;  %s420_s27 = sld [smem:[#allocation5 + $0x6]]  ;;  %s421_s29 = sld [smem:[#allocation5 + $0x7]] }
  0x2d   :  { %508 = vmatpush3.bf16.msra.mxu0 %v505_v26  ;;  %v146_v58 = vsel %vm141_vm15, %v144_v56, %v139_v55  ;;  %v151_v59 = vstv %s414_s12  ;;  %v187_v61 = vstv %s422_s2  ;;  %v155_v62 = vstv %s154_s17  ;;  %s560_s11 = scalar_lea.hbm %s804_s4, 16 }
  0x2e   :  { %510 = vmatprep.subr.bf16.mxu0 %v509_v43  ;;  %v153_v60 = vsel %vm148_vm12, %v151_v59, %v146_v58  ;;  %v189_v63 = vsel %vm99_vm8, %v187_v61, 0  ;;  %v191_v0 = vstv %s423_s18  ;;  %v156_v1 = vsel %vm43_vm0, %v155_v62, 0  ;;  %p561_p10 = scmp.ne.s32.totalorder %s804_s4, %s560_s11  ;;  %p564_p11 = scmp.lt.u32.totalorder %s560_s11, %s804_s4 }
  0x2f   :  { %vm221_vm7 = vcmp.eq.s32.totalorder %v678_v25, %v153_v60  ;;  %v159_v2 = vstv %s415_s19  ;;  %v193_v3 = vsel %vm106_vm9, %v191_v0, %v189_v63  ;;  %v195_v4 = vstv %s424_s20 }
  0x30   :  { %v160_v5 = vsel %vm49_vm1, %v159_v2, %v156_v1  ;;  %v163_v6 = vstv %s416_s21  ;;  %v197_v7 = vsel %vm113_vm10, %v195_v4, %v193_v3  ;;  %v199_v8 = vstv %s425_s22  ;;  %p566_p12 = pnand %p564_p11, %p561_p10 }
  0x31   :  { %512 = vmatpush3.bf16.msra.mxu0 %v509_v43  ;;  %v164_v10 = vsel %vm56_vm2, %v163_v6, %v160_v5  ;;  %v167_v11 = vstv %s417_s23  ;;  %v201_v12 = vsel %vm120_vm11, %v199_v8, %v197_v7  ;;  %v203_v13 = vstv %s426_s0 }
  0x32   :  { %514 = vmatprep.subr.bf16.mxu0 %v513_v52  ;;  %v168_v14 = vsel %vm63_vm3, %v167_v11, %v164_v10  ;;  %v171_v15 = vstv %s418_s1  ;;  %v205_v16 = vsel %vm127_vm13, %v203_v13, %v201_v12  ;;  %v207_v17 = vstv %s427_s24 }
  0x33   :  { %v172_v18 = vsel %vm70_vm4, %v171_v15, %v168_v14  ;;  %v175_v19 = vstv %s419_s25  ;;  %v209_v21 = vsel %vm134_vm14, %v207_v17, %v205_v16  ;;  %v211_v22 = vstv %s428_s26 }
  0x34   :  { %v176_v23 = vsel %vm77_vm5, %v175_v19, %v172_v18  ;;  %v179_v24 = vstv %s420_s27  ;;  %v213_v26 = vsel %vm141_vm15, %v211_v22, %v209_v21  ;;  %v215_v27 = vstv %s429_s28 }
  0x35   :  { %516 = vmatpush3.bf16.msra.mxu0 %v513_v52  ;;  %v180_v28 = vsel %vm84_vm6, %v179_v24, %v176_v23  ;;  %v183_v29 = vstv %s421_s29  ;;  %v217_v30 = vsel %vm148_vm12, %v215_v27, %v213_v26  ;;  %vm807_vm0 = vcmp.eq.s32.totalorder %v628_v9, 7 }
  0x36   :  { %518 = vmatprep.subr.bf16.mxu0 %v517_v57  ;;  %v184_v31 = vsel %vm807_vm0, %v183_v29, %v180_v28  ;;  %vm327_vm1 = vcmp.eq.s32.totalorder %v678_v25, %v217_v30  ;;  %v577_v32 = vmov 0.0   ;;  %vm303_vm3 = vcmp.lt.s32.totalorder %v678_v25, 65 }
  0x37   :  { %vm326_vm2 = vcmp.eq.s32.totalorder %v678_v25, %v184_v31  ;;  %v435_v33 = vsel %vm327_vm1, 1.0, %v577_v32  ;;  %vm351_vm4 = vcmask 7168  }
  0x38   :  { %v434_v34 = vsel %vm326_vm2, 1.0, %v577_v32 }
  0x39   :  { %520 = vmatpush3.bf16.msra.mxu0 %v517_v57 }
  0x3c   :  { %487 = vmatmul.mubr.msk.f32.vlgmr.msra.gmra.mrb[0].mxu0 %vm221_vm7, %v576_v44 }
 0x10f   :  { %v488_v35 = vpop.f32.mrb[0].mxu0 }
 0x110   :  { %302 = vst [vmem:[%s803_s3 + $0x8] sm:$0xff] %v488_v35  ;;  %v292_v36 = vpop.f32.mrb[1].mxu0  ;;  %v333_v20 = vmul.f32 %v488_v35, %v435_v33  ;;  %v305_v38 = vsel %vm303_vm3, %v488_v35, -1e+30 }
 0x111   :  { %301 = vst [vmem:[%s803_s3] sm:$0xff] %v292_v36  ;;  %v304_v9 = vsel %vm303_vm3, %v292_v36, -1e+30  ;;  %v332_v37 = vmul.f32 %v434_v34, %v292_v36 }
 0x112   :  { %306 = vmax.xlane.f32.xlu0 %v304_v9 }
 0x116   :  { %308 = vmax.xlane.f32.xlu0 %v305_v38 }
 0x11a   :  { %334 = vadd.xlane.f32.xlu0 %v332_v37 }
 0x19f   :  { %v307_v39 = vpop.xlane.xlu0 %306 }
 0x1a0   :  { %v310_v25 = vsub.f32 %v304_v9, %v307_v39 }
 0x1a2   :  { %v312_v40 = vmul.f32 1.442695, %v310_v25 }
 0x1a3   :  { %v309_v41 = vpop.xlane.xlu0 %308 }
 0x1a4   :  { %v311_v42 = vsub.f32 %v305_v38, %v309_v41  ;;  %528 = vpow2.f32 %v312_v40 }
 0x1a6   :  { %v314_v43 = vmul.f32 1.442695, %v311_v42 }
 0x1a7   :  { %v335_v53 = vpop.xlane.xlu0 %334 }
 0x1a8   :  { %530 = vpow2.f32 %v314_v43 }
 0x1ae   :  { %v529_v44 = vpop.eup %528 }
 0x1af   :  { %316 = vadd.xlane.f32.xlu1 %v529_v44 }
 0x1b2   :  { %v531_v45 = vpop.eup %530 }
 0x1b3   :  { %318 = vadd.xlane.f32.xlu1 %v531_v45 }
 0x1b7   :  { %336 = vadd.xlane.f32.xlu1 %v333_v20 }
 0x23c   :  { %v317_v46 = vpop.xlane.xlu1 %316 }
 0x23d   :  { %532 = vlog2.f32 %v317_v46 }
 0x240   :  { %v319_v47 = vpop.xlane.xlu1 %318 }
 0x241   :  { %534 = vlog2.f32 %v319_v47 }
 0x244   :  { %v337_v56 = vpop.xlane.xlu1 %336 }
 0x247   :  { %v533_v48 = vpop.eup %532 }
 0x248   :  { %v321_v49 = vmul.f32 0.6931472, %v533_v48 }
 0x24a   :  { %v324_v50 = vadd.f32 %v321_v49, %v307_v39 }
 0x24b   :  { %v535_v51 = vpop.eup %534 }
 0x24c   :  { %v323_v52 = vmul.f32 0.6931472, %v535_v51  ;;  %v347_v55 = vsub.f32 %v324_v50, %v335_v53 }
 0x24e   :  { %v325_v54 = vadd.f32 %v323_v52, %v309_v41  ;;  %v352_v58 = vsel %vm351_vm4, %v347_v55, 0.0 }
 0x250   :  { %v348_v57 = vsub.f32 %v325_v54, %v337_v56 }
 0x252   :  { %v353_v59 = vsel %vm351_vm4, %v348_v57, 0.0 }
 0x253   :  { %v354_v60 = vadd.f32 %v353_v59, %v352_v58 }
 0x255   :  { %355 = vadd.xlane.f32.xlu0 %v354_v60 }
 0x2e2   :  { %v356_v61 = vpop.xlane.xlu0 %355 }
 0x2e3   :  { %v357_v62 = vrot.slane %v356_v61, 4 }
 0x2e5   :  { %v358_v63 = vadd.f32 %v357_v62, %v356_v61 }
 0x2e7   :  { %v359_v0 = vrot.slane %v358_v63, 2 }
 0x2e9   :  { %v360_v1 = vadd.f32 %v359_v0, %v358_v63 }
 0x2eb   :  { %v361_v2 = vrot.slane %v360_v1, 1 }
 0x2ed   :  { %v362_v3 = vadd.f32 %v361_v2, %v360_v1 }
 0x2ef   :  { %521 = vpush %v362_v3 }
 0x320   :  { %s522_s3 = spop %521 }
 0x321   :  { %s380_s8 = smul.f32 0.0625, %s522_s3 }
 0x323   :  { %382 = sst [smem:[#allocation6]] %s380_s8 }
 0x324   :  { %569 = shalt.err (!%p566_p12)
}
 0x325   :  { %s578_s16 = smov [#allocation6]  }
 0x326   :  { %392 = dma.smem_to_hbm %s578_s16, 16, %s804_s4, [#allocation7]  }
 0x327   :  { %572 = dma.done.wait [#allocation7], 16  }
 0x328   :  { %573 = vsyncadd [#allocation7], 4294967280 }
 0x329   :  { %398 = sfence }
 0x32a   :  { %399 = vsyncpa [#allocation7], 1 }

</bundles_post_ra>
